<compile_context>
chip_gen: v5e
topology: v5e:2x2
jax: 0.10.0
libtpu: 0.0.40
codegen_flags: <defaults>
</compile_context>

<pallas_src>
import functools

import jax
import jax.numpy as jnp
from jax.experimental import pallas as pl
from jax.experimental.pallas import tpu as pltpu

_LANE = 128
_SUBLANE = 8


def _round_up(x, m):
    return ((x + m - 1) // m) * m


def _cdiv(a, b):
    return (a + b - 1) // b


def _mlp_kernel(num_hidden, x_ref, *refs):
    """refs = (w_in, b_in, [w_h, b_h]*num_hidden, w_out, b_out, out_ref, feat_ref).

    Weights arrive pre-transposed [in, out] in bf16, zero-padded; biases f32
    [1, out]. One grid step processes one row-tile of the batch; the whole
    weight set stays VMEM-resident (single-buffered) across grid steps.
    """
    w_in_ref, b_in_ref = refs[0], refs[1]
    hidden_refs = refs[2:2 + 2 * num_hidden]
    w_out_ref = refs[2 + 2 * num_hidden]
    b_out_ref = refs[3 + 2 * num_hidden]
    out_ref = refs[4 + 2 * num_hidden]
    feat_ref = refs[5 + 2 * num_hidden]

    cdt = w_in_ref.dtype  # compute dtype (bf16); both dot operands must be cdt.

    # input layer: bf16 x bf16 MXU matmul, f32 accumulate, f32 bias + relu (VPU)
    h = jnp.dot(x_ref[...].astype(cdt), w_in_ref[...],
                preferred_element_type=jnp.float32)
    h = jnp.maximum(h + b_in_ref[...], 0.0)
    # hidden layers (statically unrolled)
    for i in range(num_hidden):
        w_ref = hidden_refs[2 * i]
        b_ref = hidden_refs[2 * i + 1]
        h = jnp.dot(h.astype(cdt), w_ref[...], preferred_element_type=jnp.float32)
        h = jnp.maximum(h + b_ref[...], 0.0)
    # output layer (no activation)
    out = jnp.dot(h.astype(cdt), w_out_ref[...], preferred_element_type=jnp.float32)
    out = out + b_out_ref[...]

    out_ref[...] = out.astype(out_ref.dtype)
    feat_ref[...] = h.astype(feat_ref.dtype)


def prepare_params(params, compute_dtype=jnp.bfloat16):
    """One-time parameter prep (do NOT call per forward).

    * Transposes PyTorch-layout weights [out, in] -> [in, out].
    * Casts weights to `compute_dtype` (bf16: MXU-native on v5e/v6e/v7x,
      halves VMEM + DMA); biases stay f32 for the f32 epilogue.
    * Pads lane (last) dims to a multiple of 128; w_in's contraction (row)
      dim only needs sublane (8) alignment. Hidden/out weight rows must match
      the previous layer's 128-padded lane width.
    """
    def pad_w(w_t, row_mult):  # w_t: [in, out]
        in_f, out_f = w_t.shape
        return jnp.pad(
            w_t.astype(compute_dtype),
            ((0, _round_up(in_f, row_mult) - in_f),
             (0, _round_up(out_f, _LANE) - out_f)))

    def pad_b(b):
        out_f = b.shape[0]
        return jnp.pad(b.astype(jnp.float32),
                       (0, _round_up(out_f, _LANE) - out_f)).reshape(1, -1)

    return {
        "state_size": int(params["w_in"].shape[1]),
        "layer_size": int(params["w_in"].shape[0]),
        "action_size": int(params["w_out"].shape[0]),
        "num_hidden": len(params["w_hidden"]),
        "compute_dtype": compute_dtype,
        "w_in": pad_w(params["w_in"].T, _SUBLANE),
        "b_in": pad_b(params["b_in"]),
        "w_hidden": [pad_w(w.T, _LANE) for w in params["w_hidden"]],
        "b_hidden": [pad_b(b) for b in params["b_hidden"]],
        "w_out": pad_w(params["w_out"].T, _LANE),
        "b_out": pad_b(params["b_out"]),
    }


def vanilla_value_net_forward(x, prepped, *, block_rows=256, min_row_tiles=None):
    """Run the fused MLP forward with a batch-tiled Pallas call.

    x:       [batch, state_size] float32
    prepped: output of prepare_params (padded, transposed, bf16 weights)
    Returns (out [batch, action_size], features [batch, layer_size]) in f32.
    """
    batch = x.shape[0]
    state_size = prepped["state_size"]
    layer_size = prepped["layer_size"]
    action_size = prepped["action_size"]
    num_hidden = prepped["num_hidden"]
    cdt = prepped["compute_dtype"]

    ps8 = prepped["w_in"].shape[0]   # padded state size  (mult of 8)
    pls = prepped["w_in"].shape[1]   # padded layer size  (mult of 128)
    pa = prepped["w_out"].shape[1]   # padded action size (mult of 128)

    # ---- batch tiling -------------------------------------------------------
    # v7x has 2 TensorCores/chip: the "parallel" batch axis only uses both
    # when the grid has >= 2 steps.  v5e/v6e are single-TC.
    if min_row_tiles is None:
        try:
            min_row_tiles = 2 if "v7" in jax.devices()[0].device_kind.lower() else 1
        except Exception:
            min_row_tiles = 1

    pb8 = _round_up(batch, _SUBLANE)
    n_tiles = max(1, _cdiv(pb8, block_rows))
    if pb8 >= _SUBLANE * min_row_tiles:
        n_tiles = max(n_tiles, min_row_tiles)
    # Balance rows across tiles instead of padding up to a full block_rows tile.
    tm = _round_up(_cdiv(pb8, n_tiles), _SUBLANE)
    padded_batch = tm * n_tiles
    grid = (n_tiles,)

    if padded_batch != batch or ps8 != state_size:
        x = jnp.pad(x, ((0, padded_batch - batch), (0, ps8 - state_size)))
    x_p = x.astype(cdt)

    weight_args = [prepped["w_in"], prepped["b_in"]]
    for w, b in zip(prepped["w_hidden"], prepped["b_hidden"]):
        weight_args += [w, b]
    weight_args += [prepped["w_out"], prepped["b_out"]]

    def resident(arr):
        # Same block for every grid step -> VMEM-resident; single-buffer it
        # (default double buffering wastes 2x VMEM on never-refetched data).
        return pl.BlockSpec(arr.shape, lambda i: (0, 0),
                            pipeline_mode=pl.Buffered(1))

    in_specs = [pl.BlockSpec((tm, ps8), lambda i: (i, 0))]
    in_specs += [resident(a) for a in weight_args]
    out_specs = (
        pl.BlockSpec((tm, pa), lambda i: (i, 0)),
        pl.BlockSpec((tm, pls), lambda i: (i, 0)),
    )

    # ---- VMEM budget --------------------------------------------------------
    resident_bytes = sum(int(a.size) * a.dtype.itemsize for a in weight_args)
    stream_bytes = 2 * tm * (x_p.dtype.itemsize * ps8 + 4 * (pa + pls))  # dbl-buffered tiles
    scratch_bytes = 2 * 4 * tm * pls                                     # in-kernel f32 h temps
    vmem_limit = int(1.3 * (resident_bytes + stream_bytes + scratch_bytes)) + (2 << 20)
    # Floor at the largest default (32 MiB) so small configs keep compiling,
    # cap at v7x's 64 MiB/TC physical VMEM (v6e could go higher if needed).
    vmem_limit = min(max(vmem_limit, 32 << 20), 64 << 20)

    flops = 2 * padded_batch * (ps8 * pls + num_hidden * pls * pls + pls * pa)
    bytes_accessed = (x_p.size * x_p.dtype.itemsize + resident_bytes
                      + 4 * padded_batch * (pa + pls))

    kernel = functools.partial(_mlp_kernel, num_hidden)
    out_p, feat_p = pl.pallas_call(
        kernel,
        grid=grid,
        in_specs=in_specs,
        out_specs=out_specs,
        out_shape=(
            jax.ShapeDtypeStruct((padded_batch, pa), jnp.float32),
            jax.ShapeDtypeStruct((padded_batch, pls), jnp.float32),
        ),
        compiler_params=pltpu.CompilerParams(
            dimension_semantics=("parallel",),
            vmem_limit_bytes=vmem_limit),
        cost_estimate=pl.CostEstimate(
            flops=flops, transcendentals=0, bytes_accessed=int(bytes_accessed)),
    )(x_p, *weight_args)

    # Slice the real (unpadded) rows / columns back out.
    # TODO(synk): callers that tolerate padded outputs can skip this slice.
    if padded_batch != batch or pa != action_size or pls != layer_size:
        return out_p[:batch, :action_size], feat_p[:batch, :layer_size]
    return out_p, feat_p


def init_params(key, state_size, action_size, layer_size, num_hidden_layers):
    """Deterministic init mimicking kaiming_normal_ (relu) for weights and
    PyTorch default uniform for biases. PyTorch layout [out_features, in_features]."""
    def kaiming(k, out_f, in_f):
        std = (2.0 / in_f) ** 0.5
        return std * jax.random.normal(k, (out_f, in_f), dtype=jnp.float32)

    def bias(k, out_f, in_f):
        bound = 1.0 / (in_f ** 0.5)
        return jax.random.uniform(k, (out_f,), jnp.float32, -bound, bound)

    keys = jax.random.split(key, 2 * (num_hidden_layers + 1))
    params = {
        "w_in": kaiming(keys[0], layer_size, state_size),
        "b_in": bias(keys[1], layer_size, state_size),
        "w_hidden": [],
        "b_hidden": [],
    }
    for i in range(num_hidden_layers - 1):
        params["w_hidden"].append(kaiming(keys[2 + 2 * i], layer_size, layer_size))
        params["b_hidden"].append(bias(keys[3 + 2 * i], layer_size, layer_size))
    params["w_out"] = kaiming(keys[-2], action_size, layer_size)
    params["b_out"] = bias(keys[-1], action_size, layer_size)
    return params


def reference_forward(x, params, compute_dtype=jnp.float32):
    """Pure-JAX reference using the same compute dtype / f32 accumulation."""
    def lin(h, w, b):
        return jnp.dot(h.astype(compute_dtype), w.T.astype(compute_dtype),
                       preferred_element_type=jnp.float32) + b
    h = jnp.maximum(lin(x, params["w_in"], params["b_in"]), 0.0)
    for w, b in zip(params["w_hidden"], params["b_hidden"]):
        h = jnp.maximum(lin(h, w, b), 0.0)
    out = lin(h, params["w_out"], params["b_out"])
    return out, h


if __name__ == "__main__":
    # Small shapes consistent with the module's forward.
    batch = 8
    state_size = 16
    action_size = 4
    layer_size = 32
    num_hidden_layers = 3  # -> dense_in + 2 hidden linears + dense_out

    key = jax.random.PRNGKey(0)
    pkey, xkey = jax.random.split(key)
    params = init_params(pkey, state_size, action_size, layer_size, num_hidden_layers)
    x = jax.random.normal(xkey, (batch, state_size), dtype=jnp.float32)

    # One-time param prep (transpose + pad + bf16 cast); reused across calls.
    prepped = prepare_params(params)

    out, feat = vanilla_value_net_forward(x, prepped)
    out = jax.block_until_ready(out)
    feat = jax.block_until_ready(feat)

    ref_out, ref_feat = reference_forward(x, params,
                                          compute_dtype=prepped["compute_dtype"])
    assert out.shape == (batch, action_size)
    assert feat.shape == (batch, layer_size)
    # bf16 matmul operands (f32 accumulate) -> compare against a bf16 reference
    # with a bf16-appropriate tolerance.
    assert jnp.allclose(out, ref_out, atol=2e-2, rtol=2e-2), "output mismatch"
    assert jnp.allclose(feat, ref_feat, atol=2e-2, rtol=2e-2), "feature mismatch"

    print("KERNEL_OK")
</pallas_src>

<mosaic_0001>
module attributes {stable_mosaic.version = 11 : i64} {
  func.func @_mlp_kernel(%arg0: i32, %arg1: memref<8x16xbf16, #tpu.memory_space<vmem>>, %arg2: memref<16x128xbf16, #tpu.memory_space<vmem>>, %arg3: memref<1x128xf32, #tpu.memory_space<vmem>>, %arg4: memref<128x128xbf16, #tpu.memory_space<vmem>>, %arg5: memref<1x128xf32, #tpu.memory_space<vmem>>, %arg6: memref<128x128xbf16, #tpu.memory_space<vmem>>, %arg7: memref<1x128xf32, #tpu.memory_space<vmem>>, %arg8: memref<128x128xbf16, #tpu.memory_space<vmem>>, %arg9: memref<1x128xf32, #tpu.memory_space<vmem>>, %arg10: memref<8x128xf32, #tpu.memory_space<vmem>>, %arg11: memref<8x128xf32, #tpu.memory_space<vmem>>) attributes {dimension_semantics = [#tpu.dimension_semantics<parallel>], iteration_bounds = array<i64: 1>, scalar_prefetch = 0 : i64, scratch_operands = 0 : i64, tpu.core_type = #tpu.core_type<tc>, window_params = [{transform_indices = @transform_0, window_bounds = array<i64: 8, 16>}, {pipeline_mode = #tpu.pipeline_mode<synchronous>, transform_indices = @transform_1, window_bounds = array<i64: 16, 128>}, {pipeline_mode = #tpu.pipeline_mode<synchronous>, transform_indices = @transform_2, window_bounds = array<i64: 1, 128>}, {pipeline_mode = #tpu.pipeline_mode<synchronous>, transform_indices = @transform_3, window_bounds = array<i64: 128, 128>}, {pipeline_mode = #tpu.pipeline_mode<synchronous>, transform_indices = @transform_4, window_bounds = array<i64: 1, 128>}, {pipeline_mode = #tpu.pipeline_mode<synchronous>, transform_indices = @transform_5, window_bounds = array<i64: 128, 128>}, {pipeline_mode = #tpu.pipeline_mode<synchronous>, transform_indices = @transform_6, window_bounds = array<i64: 1, 128>}, {pipeline_mode = #tpu.pipeline_mode<synchronous>, transform_indices = @transform_7, window_bounds = array<i64: 128, 128>}, {pipeline_mode = #tpu.pipeline_mode<synchronous>, transform_indices = @transform_8, window_bounds = array<i64: 1, 128>}, {transform_indices = @transform_9, window_bounds = array<i64: 8, 128>}, {transform_indices = @transform_10, window_bounds = array<i64: 8, 128>}]} {
    %c0 = arith.constant 0 : index
    %c0_0 = arith.constant 0 : index
    %0 = vector.load %arg1[%c0, %c0_0] : memref<8x16xbf16, #tpu.memory_space<vmem>>, vector<8x16xbf16>
    %c0_1 = arith.constant 0 : index
    %c0_2 = arith.constant 0 : index
    %1 = vector.load %arg2[%c0_1, %c0_2] : memref<16x128xbf16, #tpu.memory_space<vmem>>, vector<16x128xbf16>
    %cst = arith.constant dense<0.000000e+00> : vector<8x128xf32>
    %2 = tpu.matmul %0, %1, %cst {dimension_numbers = #tpu.dot_dimension_numbers<[1], [0], [0], [1], [0, 0, 1, 1], [], []>} : vector<8x16xbf16>, vector<16x128xbf16>, vector<8x128xf32> -> vector<8x128xf32>
    %c0_3 = arith.constant 0 : index
    %c0_4 = arith.constant 0 : index
    %3 = vector.load %arg3[%c0_3, %c0_4] : memref<1x128xf32, #tpu.memory_space<vmem>>, vector<1x128xf32>
    %4 = vector.broadcast %3 : vector<1x128xf32> to vector<8x128xf32>
    %5 = arith.addf %2, %4 : vector<8x128xf32>
    %cst_5 = arith.constant 0.000000e+00 : f32
    %6 = vector.broadcast %cst_5 : f32 to vector<8x128xf32>
    %7 = arith.maximumf %5, %6 : vector<8x128xf32>
    %8 = arith.truncf %7 : vector<8x128xf32> to vector<8x128xbf16>
    %c0_6 = arith.constant 0 : index
    %c0_7 = arith.constant 0 : index
    %9 = vector.load %arg4[%c0_6, %c0_7] : memref<128x128xbf16, #tpu.memory_space<vmem>>, vector<128x128xbf16>
    %cst_8 = arith.constant dense<0.000000e+00> : vector<8x128xf32>
    %10 = tpu.matmul %8, %9, %cst_8 {dimension_numbers = #tpu.dot_dimension_numbers<[1], [0], [0], [1], [0, 0, 1, 1], [], []>} : vector<8x128xbf16>, vector<128x128xbf16>, vector<8x128xf32> -> vector<8x128xf32>
    %c0_9 = arith.constant 0 : index
    %c0_10 = arith.constant 0 : index
    %11 = vector.load %arg5[%c0_9, %c0_10] : memref<1x128xf32, #tpu.memory_space<vmem>>, vector<1x128xf32>
    %12 = vector.broadcast %11 : vector<1x128xf32> to vector<8x128xf32>
    %13 = arith.addf %10, %12 : vector<8x128xf32>
    %cst_11 = arith.constant 0.000000e+00 : f32
    %14 = vector.broadcast %cst_11 : f32 to vector<8x128xf32>
    %15 = arith.maximumf %13, %14 : vector<8x128xf32>
    %16 = arith.truncf %15 : vector<8x128xf32> to vector<8x128xbf16>
    %c0_12 = arith.constant 0 : index
    %c0_13 = arith.constant 0 : index
    %17 = vector.load %arg6[%c0_12, %c0_13] : memref<128x128xbf16, #tpu.memory_space<vmem>>, vector<128x128xbf16>
    %cst_14 = arith.constant dense<0.000000e+00> : vector<8x128xf32>
    %18 = tpu.matmul %16, %17, %cst_14 {dimension_numbers = #tpu.dot_dimension_numbers<[1], [0], [0], [1], [0, 0, 1, 1], [], []>} : vector<8x128xbf16>, vector<128x128xbf16>, vector<8x128xf32> -> vector<8x128xf32>
    %c0_15 = arith.constant 0 : index
    %c0_16 = arith.constant 0 : index
    %19 = vector.load %arg7[%c0_15, %c0_16] : memref<1x128xf32, #tpu.memory_space<vmem>>, vector<1x128xf32>
    %20 = vector.broadcast %19 : vector<1x128xf32> to vector<8x128xf32>
    %21 = arith.addf %18, %20 : vector<8x128xf32>
    %cst_17 = arith.constant 0.000000e+00 : f32
    %22 = vector.broadcast %cst_17 : f32 to vector<8x128xf32>
    %23 = arith.maximumf %21, %22 : vector<8x128xf32>
    %24 = arith.truncf %23 : vector<8x128xf32> to vector<8x128xbf16>
    %c0_18 = arith.constant 0 : index
    %c0_19 = arith.constant 0 : index
    %25 = vector.load %arg8[%c0_18, %c0_19] : memref<128x128xbf16, #tpu.memory_space<vmem>>, vector<128x128xbf16>
    %cst_20 = arith.constant dense<0.000000e+00> : vector<8x128xf32>
    %26 = tpu.matmul %24, %25, %cst_20 {dimension_numbers = #tpu.dot_dimension_numbers<[1], [0], [0], [1], [0, 0, 1, 1], [], []>} : vector<8x128xbf16>, vector<128x128xbf16>, vector<8x128xf32> -> vector<8x128xf32>
    %c0_21 = arith.constant 0 : index
    %c0_22 = arith.constant 0 : index
    %27 = vector.load %arg9[%c0_21, %c0_22] : memref<1x128xf32, #tpu.memory_space<vmem>>, vector<1x128xf32>
    %28 = vector.broadcast %27 : vector<1x128xf32> to vector<8x128xf32>
    %29 = arith.addf %26, %28 : vector<8x128xf32>
    %c0_23 = arith.constant 0 : index
    %c0_24 = arith.constant 0 : index
    %30 = vector.load %arg10[%c0_23, %c0_24] : memref<8x128xf32, #tpu.memory_space<vmem>>, vector<8x128xf32>
    tpu.vector_store %arg10[%c0_23, %c0_24], %29 {strides = array<i32>} : memref<8x128xf32, #tpu.memory_space<vmem>>, vector<8x128xf32>,
    %c0_25 = arith.constant 0 : index
    %c0_26 = arith.constant 0 : index
    %31 = vector.load %arg11[%c0_25, %c0_26] : memref<8x128xf32, #tpu.memory_space<vmem>>, vector<8x128xf32>
    tpu.vector_store %arg11[%c0_25, %c0_26], %23 {strides = array<i32>} : memref<8x128xf32, #tpu.memory_space<vmem>>, vector<8x128xf32>,
    return
  }
  func.func @transform_0(%arg0: i32) -> (i32, i32) {
    %c0_i32 = arith.constant 0 : i32
    %c0_i32_0 = arith.constant 0 : i32
    return %arg0, %c0_i32 : i32, i32
  }
  func.func @transform_1(%arg0: i32) -> (i32, i32) {
    %c0_i32 = arith.constant 0 : i32
    %c0_i32_0 = arith.constant 0 : i32
    %c0_i32_1 = arith.constant 0 : i32
    return %c0_i32, %c0_i32_0 : i32, i32
  }
  func.func @transform_2(%arg0: i32) -> (i32, i32) {
    %c0_i32 = arith.constant 0 : i32
    %c0_i32_0 = arith.constant 0 : i32
    %c0_i32_1 = arith.constant 0 : i32
    return %c0_i32, %c0_i32_0 : i32, i32
  }
  func.func @transform_3(%arg0: i32) -> (i32, i32) {
    %c0_i32 = arith.constant 0 : i32
    %c0_i32_0 = arith.constant 0 : i32
    %c0_i32_1 = arith.constant 0 : i32
    return %c0_i32, %c0_i32_0 : i32, i32
  }
  func.func @transform_4(%arg0: i32) -> (i32, i32) {
    %c0_i32 = arith.constant 0 : i32
    %c0_i32_0 = arith.constant 0 : i32
    %c0_i32_1 = arith.constant 0 : i32
    return %c0_i32, %c0_i32_0 : i32, i32
  }
  func.func @transform_5(%arg0: i32) -> (i32, i32) {
    %c0_i32 = arith.constant 0 : i32
    %c0_i32_0 = arith.constant 0 : i32
    %c0_i32_1 = arith.constant 0 : i32
    return %c0_i32, %c0_i32_0 : i32, i32
  }
  func.func @transform_6(%arg0: i32) -> (i32, i32) {
    %c0_i32 = arith.constant 0 : i32
    %c0_i32_0 = arith.constant 0 : i32
    %c0_i32_1 = arith.constant 0 : i32
    return %c0_i32, %c0_i32_0 : i32, i32
  }
  func.func @transform_7(%arg0: i32) -> (i32, i32) {
    %c0_i32 = arith.constant 0 : i32
    %c0_i32_0 = arith.constant 0 : i32
    %c0_i32_1 = arith.constant 0 : i32
    return %c0_i32, %c0_i32_0 : i32, i32
  }
  func.func @transform_8(%arg0: i32) -> (i32, i32) {
    %c0_i32 = arith.constant 0 : i32
    %c0_i32_0 = arith.constant 0 : i32
    %c0_i32_1 = arith.constant 0 : i32
    return %c0_i32, %c0_i32_0 : i32, i32
  }
  func.func @transform_9(%arg0: i32) -> (i32, i32) {
    %c0_i32 = arith.constant 0 : i32
    %c0_i32_0 = arith.constant 0 : i32
    return %arg0, %c0_i32 : i32, i32
  }
  func.func @transform_10(%arg0: i32) -> (i32, i32) {
    %c0_i32 = arith.constant 0 : i32
    %c0_i32_0 = arith.constant 0 : i32
    return %arg0, %c0_i32 : i32, i32
  }
}

</mosaic_0001>

<bundles_post_ra>
// kernel: tpu_custom_call.1
= control target key start
LH: loop header
LB: loop body
LE: loop exit
PB: predicated region body
PF: predicated region fallthrough
CT: control target
= control target key end

     0   :  { %16 = vsyncpa [#allocation3], 0  ;;  %s843_s0 = inlined_call_operand.hbm [shape: bf16[8,16], index: 0, kind: input, shape index: {}]   ;;  %s844_s1 = inlined_call_operand.hbm [shape: bf16[16,128], index: 1, kind: input, shape index: {}]   ;;  %s845_s2 = inlined_call_operand.vmem [shape: f32[1,128], index: 2, kind: input, shape index: {}]   ;;  %s846_s3 = inlined_call_operand.hbm [shape: bf16[128,128], index: 3, kind: input, shape index: {}]   ;;  %s847_s4 = inlined_call_operand.vmem [shape: f32[1,128], index: 4, kind: input, shape index: {}]   ;;  %s848_s5 = inlined_call_operand.hbm [shape: bf16[128,128], index: 5, kind: input, shape index: {}]   ;;  %s849_s6 = inlined_call_operand.vmem [shape: f32[1,128], index: 6, kind: input, shape index: {}]   ;;  %s850_s7 = inlined_call_operand.hbm [shape: bf16[128,128], index: 7, kind: input, shape index: {}]   ;;  %s851_s8 = inlined_call_operand.vmem [shape: f32[1,128], index: 8, kind: input, shape index: {}]   ;;  %s852_s9 = inlined_call_operand.hbm [shape: f32[8,128], index: 9, kind: output, shape index: {0}]   ;;  %s853_s10 = inlined_call_operand.hbm [shape: f32[8,128], index: 10, kind: output, shape index: {1}]  }
   0x1   :  { %17 = vsyncpa [#allocation6], 0 }
   0x2   :  { %18 = vsyncpa [#allocation9], 0 }
   0x3   :  { %19 = vsyncpa [#allocation4], 0  ;;  %s36_s15 = sshll.u32 %s844_s1, 4  ;;  %s37_s15 = int_to_ptr.hbm [resolvable:$true] %s36_s15 }
   0x4   :  { %20 = vsyncpa [#allocation13], 0  ;;  %s746_s16 = smov [#allocation5]   ;;  %s66_s20 = sshll.u32 %s848_s5, 4  ;;  %s67_s20 = int_to_ptr.hbm [resolvable:$true] %s66_s20 }
   0x5   :  { %s38_s17 = sshll.u32 %s746_s16, 4  ;;  %s747_s21 = smov 64   ;;  %s39_s17 = int_to_ptr.vmem [resolvable:$true] %s38_s17 }
   0x6   :  { %s748_s22 = smov 4   ;;  %s749_s23 = smov [#allocation8]  }
   0x7   :  { %44 = dma.hbm_to_vmem [thread:$0]  %s37_s15, 128, %s39_s17, [#allocation6], %s747_s21, %s747_s21, %s748_s22  }
   0x8   :  { %s68_s24 = sshll.u32 %s749_s23, 4  ;;  %s26_s27 = sshll.u32 %s843_s0, 4  ;;  %s69_s24 = int_to_ptr.vmem [resolvable:$true] %s68_s24  ;;  %s27_s27 = int_to_ptr.hbm [resolvable:$true] %s26_s27 }
   0x9   :  { %74 = dma.hbm_to_vmem [thread:$0]  %s67_s20, 1024, %s69_s24, [#allocation9], %s747_s21, %s747_s21, %s748_s22  }
   0xa   :  { %s51_s29 = sshll.u32 %s846_s3, 4  ;;  %s750_s30 = smov [#allocation2]   ;;  %s52_s29 = int_to_ptr.hbm [resolvable:$true] %s51_s29 }
   0xb   :  { %s28_s11 = sshll.u32 %s750_s30, 4  ;;  %s751_s5 = smov [#allocation7]   ;;  %s29_s11 = int_to_ptr.vmem [resolvable:$true] %s28_s11 }
   0xc   :  { %31 = dma.hbm_to_vmem [thread:$0]  %s27_s27, 64, %s29_s11, [#allocation3]  }
   0xd   :  { %s53_s12 = sshll.u32 %s751_s5, 4  ;;  %s81_s15 = sshll.u32 %s850_s7, 4  ;;  %s54_s12 = int_to_ptr.vmem [resolvable:$true] %s53_s12  ;;  %s82_s15 = int_to_ptr.hbm [resolvable:$true] %s81_s15 }
   0xe   :  { %59 = dma.hbm_to_vmem [thread:$0]  %s52_s29, 1024, %s54_s12, [#allocation6], %s747_s21, %s747_s21, %s748_s22  }
   0xf   :  { %s752_s0 = smov [#allocation10]  }
  0x10   :  { %s83_s16 = sshll.u32 %s752_s0, 4  ;;  %s84_s16 = int_to_ptr.vmem [resolvable:$true] %s83_s16 }
  0x11   :  { %89 = dma.hbm_to_vmem [thread:$0]  %s82_s15, 1024, %s84_s16, [#allocation9], %s747_s21, %s747_s21, %s748_s22  }
  0x12   :  { %736 = dma.done.wait [#allocation3], 64  }
  0x13   :  { %737 = vsyncadd [#allocation3], 4294967232 }
  0x14   :  { %738 = dma.done.wait [#allocation6], 1152  }
  0x15   :  { %739 = vsyncadd [#allocation6], 4294966144 }
  0x16   :  { %740 = dma.done.wait [#allocation9], 2048  }
  0x17   :  { %741 = vsyncadd [#allocation9], 4294965248  ;;  %v530_v0 = vld [vmem:[#allocation5] sm:$0xff]  ;;  %v113_v2 = vld [vmem:[#allocation2] sm:$0xf]  ;;  %vm126_vm0 = vcmask 130048  }
  0x18   :  { %v538_v1 = vld [vmem:[#allocation7 + $0x38] sm:$0xff]  ;;  %137 = vmatpush.bf16.msra.mxu0 %v530_v0  ;;  %v537_v3 = vld [vmem:[#allocation7 + $0x30] sm:$0xff]  ;;  %v536_v4 = vld [vmem:[#allocation7 + $0x28] sm:$0xff]  ;;  %s412_s23 = sshll.u32 %s853_s10, 4  ;;  %s401_s28 = sshll.u32 %s852_s9, 4  ;;  %s413_s23 = int_to_ptr.hbm [resolvable:$true] %s412_s23  ;;  %s402_s28 = int_to_ptr.hbm [resolvable:$true] %s401_s28 }
  0x19   :  { %213 = vmatpush.bf16.msra.mxu1 %v538_v1  ;;  %v535_v5 = vld [vmem:[#allocation7 + $0x20] sm:$0xff]  ;;  %v534_v6 = vld [vmem:[#allocation7 + $0x18] sm:$0xff]  ;;  %v533_v7 = vld [vmem:[#allocation7 + $0x10] sm:$0xff] }
  0x1a   :  { %v532_v8 = vld [vmem:[#allocation7 + $0x8] sm:$0xff]  ;;  %v531_v9 = vld [vmem:[#allocation7] sm:$0xff]  ;;  %v546_v10 = vld [vmem:[#allocation8 + $0x38] sm:$0xff] }
  0x1b   :  { %433 = vmatmul.msk.bf16.vlgmr.msra.gmra.mxu0 %vm126_vm0, %v113_v2  ;;  %296 = vmatpush.bf16.msra.mxu2 %v546_v10  ;;  %v545_v11 = vld [vmem:[#allocation8 + $0x30] sm:$0xff]  ;;  %v544_v12 = vld [vmem:[#allocation8 + $0x28] sm:$0xff]  ;;  %v543_v13 = vld [vmem:[#allocation8 + $0x20] sm:$0xff] }
  0x1c   :  { %v542_v14 = vld [vmem:[#allocation8 + $0x18] sm:$0xff]  ;;  %v541_v15 = vld [vmem:[#allocation8 + $0x10] sm:$0xff]  ;;  %v540_v22 = vld [vmem:[#allocation8 + $0x8] sm:$0xff] }
  0x1d   :  { %214 = vmatpush.bf16.msra.mxu1 %v537_v3  ;;  %v564_v16 = vld [vmem:[%s845_s2] ss:$0 sm:$0xff]  ;;  %v539_v23 = vld [vmem:[#allocation8] sm:$0xff]  ;;  %v554_v24 = vld [vmem:[#allocation10 + $0x38] sm:$0xff] }
  0x1e   :  { %379 = vmatpush.bf16.msra.mxu3 %v554_v24  ;;  %v553_v25 = vld [vmem:[#allocation10 + $0x30] sm:$0xff]  ;;  %v552_v26 = vld [vmem:[#allocation10 + $0x28] sm:$0xff]  ;;  %v551_v27 = vld [vmem:[#allocation10 + $0x20] sm:$0xff] }
  0x1f   :  { %297 = vmatpush.bf16.msra.mxu2 %v545_v11  ;;  %v550_v28 = vld [vmem:[#allocation10 + $0x18] sm:$0xff]  ;;  %v549_v29 = vld [vmem:[#allocation10 + $0x10] sm:$0xff]  ;;  %v548_v36 = vld [vmem:[#allocation10 + $0x8] sm:$0xff] }
  0x20   :  { %v565_v30 = vld [vmem:[%s847_s4] ss:$0 sm:$0xff]  ;;  %v547_v37 = vld [vmem:[#allocation10] sm:$0xff]  ;;  %s753_s4 = smov [#allocation12]  }
  0x21   :  { %215 = vmatpush.bf16.msra.mxu1 %v536_v4  ;;  %v566_v38 = vld [vmem:[%s849_s6] ss:$0 sm:$0xff]  ;;  %s410_s20 = sshll.u32 %s753_s4, 4  ;;  %s754_s6 = smov [#allocation11]   ;;  %s411_s20 = int_to_ptr.vmem [resolvable:$true] %s410_s20 }
  0x22   :  { %380 = vmatpush.bf16.msra.mxu3 %v553_v25  ;;  %v567_v44 = vld [vmem:[%s851_s8] ss:$0 sm:$0xff]  ;;  %s399_s26 = sshll.u32 %s754_s6, 4  ;;  %s400_s26 = int_to_ptr.vmem [resolvable:$true] %s399_s26 }
  0x23   :  { %298 = vmatpush.bf16.msra.mxu2 %v544_v12 }
  0x25   :  { %216 = vmatpush.bf16.msra.mxu1 %v535_v5 }
  0x26   :  { %381 = vmatpush.bf16.msra.mxu3 %v552_v26 }
  0x27   :  { %299 = vmatpush.bf16.msra.mxu2 %v543_v13 }
  0x29   :  { %217 = vmatpush.bf16.msra.mxu1 %v534_v6 }
  0x2a   :  { %382 = vmatpush.bf16.msra.mxu3 %v551_v27 }
  0x2b   :  { %300 = vmatpush.bf16.msra.mxu2 %v542_v14 }
  0x2d   :  { %218 = vmatpush.bf16.msra.mxu1 %v533_v7 }
  0x2e   :  { %383 = vmatpush.bf16.msra.mxu3 %v550_v28 }
  0x2f   :  { %301 = vmatpush.bf16.msra.mxu2 %v541_v15 }
  0x31   :  { %219 = vmatpush.bf16.msra.mxu1 %v532_v8 }
  0x32   :  { %384 = vmatpush.bf16.msra.mxu3 %v549_v29 }
  0x33   :  { %302 = vmatpush.bf16.msra.mxu2 %v540_v22 }
  0x35   :  { %220 = vmatpush.bf16.msra.mxu1 %v531_v9 }
  0x36   :  { %385 = vmatpush.bf16.msra.mxu3 %v548_v36 }
  0x37   :  { %303 = vmatpush.bf16.msra.mxu2 %v539_v23 }
  0x3a   :  { %386 = vmatpush.bf16.msra.mxu3 %v547_v37 }
  0x98   :  { %v139_v17 = vpop.f32.mrf.mxu0 }
  0x99   :  { %v140_v18 = vadd.f32 %v564_v16, %v139_v17 }
  0x9b   :  { %v143_v19 = vmax.f32 %v140_v18, 0.0 }
  0x9d   :  { %v144_v20 = vpack.c.bf16 %v143_v19, %v143_v19 }
  0x9f   :  { %221 = vmatmul.bf16.vlgmr.msra.gmra.mxu1 %v144_v20 }
  0xa0   :  { %v141_v21 = vpop.f32.mrf.mxu0 }
 0x11c   :  { %v222_v31 = vpop.f32.mrf.mxu1 }
 0x11d   :  { %v223_v32 = vadd.f32 %v565_v30, %v222_v31 }
 0x11f   :  { %v226_v33 = vmax.f32 %v223_v32, 0.0 }
 0x121   :  { %v227_v34 = vpack.c.bf16 %v226_v33, %v226_v33 }
 0x123   :  { %304 = vmatmul.bf16.vlgmr.msra.gmra.mxu2 %v227_v34 }
 0x124   :  { %v224_v35 = vpop.f32.mrf.mxu1 }
 0x1a6   :  { %v305_v39 = vpop.f32.mrf.mxu2 }
 0x1a7   :  { %v306_v40 = vadd.f32 %v566_v38, %v305_v39 }
 0x1a9   :  { %v309_v41 = vmax.f32 %v306_v40, 0.0 }
 0x1ab   :  { %393 = vst [vmem:[#allocation12] sm:$0xff] %v309_v41  ;;  %v310_v42 = vpack.c.bf16 %v309_v41, %v309_v41 }
 0x1ac   :  { %415 = dma.vmem_to_hbm [thread:$0]  %s411_s20, 128, %s413_s23, [#allocation13]  }
 0x1ad   :  { %387 = vmatmul.bf16.vlgmr.msra.gmra.mxu3 %v310_v42 }
 0x1ae   :  { %v307_v43 = vpop.f32.mrf.mxu2 }
 0x230   :  { %v388_v45 = vpop.f32.mrf.mxu3 }
 0x231   :  { %v389_v46 = vadd.f32 %v567_v44, %v388_v45 }
 0x233   :  { %392 = vst [vmem:[#allocation11] sm:$0xff] %v389_v46 }
 0x234   :  { %404 = dma.vmem_to_hbm [thread:$0]  %s400_s26, 128, %s402_s28, [#allocation4]  }
 0x238   :  { %v390_v47 = vpop.f32.mrf.mxu3 }
 0x239   :  { %742 = dma.done.wait [#allocation4], 128  }
 0x23a   :  { %743 = vsyncadd [#allocation4], 4294967168 }
 0x23b   :  { %744 = dma.done.wait [#allocation13], 128  }
 0x23c   :  { %745 = vsyncadd [#allocation13], 4294967168 }
 0x23d   :  { %424 = vsyncpa [#allocation3], 1 }
 0x23e   :  { %425 = vsyncpa [#allocation6], 1 }
 0x23f   :  { %426 = vsyncpa [#allocation9], 1 }
 0x240   :  { %427 = vsyncpa [#allocation4], 1 }
 0x241   :  { %428 = vsyncpa [#allocation13], 1 }

</bundles_post_ra>
